<compile_context>
chip_gen: v7x
topology: tpu7x:2x2x1
jax: 0.10.0
libtpu: 0.0.40
codegen_flags: <defaults>
</compile_context>

<pallas_src>
import functools
from typing import NamedTuple

import jax
import jax.numpy as jnp
from jax.experimental import pallas as pl
from jax.experimental.pallas import tpu as pltpu


def _round_up(x, m):
    return (x + m - 1) // m * m


def _physical_vmem_bytes():
    """Best-effort per-core VMEM capacity (falls back to the v7x 64 MiB)."""
    try:
        info = pltpu.get_tpu_info()
        cap = getattr(info, "vmem_capacity_bytes", None)
        if cap:
            return int(cap)
    except Exception:
        pass
    return 64 * 1024 * 1024


# ------------------------------------------------------------------ kernel --

def lstm_chunk_kernel(x_ref, m_ref, h0_ref, c0_ref, b_ref, wx_hbm, wh_hbm,
                      h_out, c_out, hsum_out, last_out,
                      wx_vmem, wh_vmem, wsem, *, time_chunk, seq_len):
    # Grid: (batch_tiles, time_chunks); batch "parallel", time "arbitrary".
    # x_ref:   (Tt, TB, Dp) bf16   raw inputs for this time chunk
    # m_ref:   (Tt, TB, 1)  f32    mask for this time chunk (0 on padding)
    # h0/c0:   (TB, Hp)     f32    initial state for this batch tile
    # b_ref:   (1, 4*Hp)    f32    bias (tiny, auto-pipelined)
    # wx_hbm:  (Dp, 4*Hp)   bf16   HBM (memory_space=pl.ANY)
    # wh_hbm:  (Hp, 4*Hp)   bf16   HBM (memory_space=pl.ANY)
    # outputs: (TB, Hp)     f32    VMEM-resident across t (constant index_map)
    # wx_vmem/wh_vmem: single-buffered VMEM weight residency (manual DMA)
    tt = pl.program_id(1)
    Hp = h_out.shape[-1]

    @pl.when(tt == 0)
    def _init():
        # Single-buffered weight residency: one explicit HBM->VMEM copy per
        # batch tile instead of the auto-pipeliner's two buffers.
        cx = pltpu.make_async_copy(wx_hbm, wx_vmem, wsem.at[0])
        ch = pltpu.make_async_copy(wh_hbm, wh_vmem, wsem.at[1])
        cx.start()
        ch.start()
        cx.wait()
        ch.wait()
        h_out[...] = h0_ref[...]
        c_out[...] = c0_ref[...]
        hsum_out[...] = jnp.zeros_like(hsum_out)
        last_out[...] = jnp.zeros_like(last_out)

    wx = wx_vmem[...]
    wh = wh_vmem[...]
    bias = b_ref[...]

    h = h_out[...]
    c = c_out[...]
    hsum = hsum_out[...]
    last = last_out[...]

    needs_guard = (seq_len % time_chunk) != 0
    base = tt * time_chunk

    # Unrolled over the time chunk: the x @ Wx dots have no serial dependency
    # and get hoisted/overlapped by the scheduler; only h @ Wh is on the
    # recurrent critical path.
    for s in range(time_chunk):
        gates = (jnp.dot(x_ref[s], wx, preferred_element_type=jnp.float32)
                 + jnp.dot(h.astype(jnp.bfloat16), wh,
                           preferred_element_type=jnp.float32)
                 + bias)

        # Gate slices are 128-lane aligned (gate k lives at columns k*Hp ..).
        i_t = jax.nn.sigmoid(gates[:, 0 * Hp:1 * Hp])
        f_t = jax.nn.sigmoid(gates[:, 1 * Hp:2 * Hp])
        o_t = jax.nn.sigmoid(gates[:, 2 * Hp:3 * Hp])
        z_t = jnp.tanh(gates[:, 3 * Hp:4 * Hp])

        c_new = i_t * z_t + f_t * c
        h_new = o_t * jnp.tanh(c_new)          # self.activation = nn.Tanh()

        if needs_guard:
            # Timesteps beyond the true sequence length (time padding) must
            # not perturb the carried h/c state.
            v = (base + s < seq_len).astype(jnp.float32)
            h = v * h_new + (1.0 - v) * h
            c = v * c_new + (1.0 - v) * c
        else:
            h, c = h_new, c_new

        m = m_ref[s]                            # (TB, 1), 0 on padded rows/steps
        hsum = hsum + m * h
        last = (1.0 - m) * last + m * h

    h_out[...] = h
    c_out[...] = c
    hsum_out[...] = hsum
    last_out[...] = last


# ------------------------------------------------------------- param prep --

class PreparedLSTMParams(NamedTuple):
    wx_p: jax.Array      # (Dp, 4*Hp) bf16
    wh_p: jax.Array      # (Hp, 4*Hp) bf16
    b_p: jax.Array       # (1, 4*Hp)  f32
    input_dim: int
    hidden_dim: int
    Dp: int
    Hp: int
    G: int


def prepare_params(params):
    """Pad / cast (wx, wh, b) once per parameter set (hoisted out of calls).

    wx: (D, 4H), wh: (H, 4H), b: (4H,) with gate column order [i|f|o|z].
    Gate k is placed at lanes [k*Hp, k*Hp + H); the rest is zero.
    """
    wx, wh, b = params
    D, four_h = wx.shape
    H = four_h // 4
    Hp = _round_up(H, 128)                    # lane-aligned per-gate width
    Dp = _round_up(D, 16)                     # bf16 sublane packing
    G = 4 * Hp

    def place(w):                             # (rows, 4H) -> (rows, 4*Hp)
        out = jnp.zeros((w.shape[0], G), jnp.float32)
        for k in range(4):
            out = out.at[:, k * Hp:k * Hp + H].set(
                w[:, k * H:(k + 1) * H].astype(jnp.float32))
        return out

    wx_p = jnp.zeros((Dp, G), jnp.bfloat16).at[:D].set(
        place(wx).astype(jnp.bfloat16))
    wh_p = jnp.zeros((Hp, G), jnp.bfloat16).at[:H].set(
        place(wh).astype(jnp.bfloat16))
    b_p = place(b[None, :])
    return PreparedLSTMParams(wx_p, wh_p, b_p, int(D), int(H),
                              int(Dp), int(Hp), int(G))


def _as_prepared(params):
    if isinstance(params, PreparedLSTMParams):
        return params
    return prepare_params(params)


# ----------------------------------------------------------------- wrapper --

def _lstm_sequence(x_seq, mask, h0, c0, prep, *, batch_tile=128, time_chunk=8):
    """Fused LSTM over a full sequence.

    x_seq: (B, T, D), mask: (B, T), h0/c0: (B, H).
    Returns (h_final, c_final, masked_h_sum, last_h), each (B, H) f32.
    """
    B, T, D = x_seq.shape
    H = prep.hidden_dim
    assert D == prep.input_dim, "input dim does not match prepared params"
    Dp, Hp, G = prep.Dp, prep.Hp, prep.G

    # ---- tile selection -----------------------------------------------------
    Tt = max(1, min(int(time_chunk), T))
    TB = min(_round_up(B, 16), max(16, _round_up(int(batch_tile), 16)))
    # v7x megacore: make the "parallel" batch axis span >= 2 tiles when possible.
    if B >= 32 and _round_up(B, TB) // TB < 2:
        TB = max(16, _round_up((B + 1) // 2, 16))

    # ---- VMEM budget from actual block sizes --------------------------------
    phys = _physical_vmem_bytes()
    budget = phys * 3 // 4

    def vmem_estimate(tb, tt):
        return (2 * tt * tb * Dp * 2          # x chunk (bf16, double-buffered)
                + 2 * tt * tb * 4             # mask chunk
                + 2 * 2 * tb * Hp * 4         # h0 / c0
                + 2 * G * 4                   # bias
                + (Dp + Hp) * G * 2           # Wx/Wh scratch (single-buffered)
                + 2 * 4 * tb * Hp * 4         # four resident f32 outputs
                + 6 * tb * G * 4)             # gate / activation temporaries

    while vmem_estimate(TB, Tt) > budget and Tt > 1:
        Tt = max(1, Tt // 2)
    while vmem_estimate(TB, Tt) > budget and TB > 16:
        TB = max(16, _round_up(TB // 2, 16))

    Bp = _round_up(B, TB)
    nb = Bp // TB
    Tp = _round_up(T, Tt)
    nt = Tp // Tt
    vmem_limit = int(min(max(vmem_estimate(TB, Tt) * 5 // 4 + (4 << 20),
                             32 << 20),
                         budget))

    # ---- activations: time-major, zero-padded -------------------------------
    x_p = jnp.zeros((Tp, Bp, Dp), jnp.bfloat16).at[:T, :B, :D].set(
        jnp.transpose(x_seq, (1, 0, 2)).astype(jnp.bfloat16))
    m_p = jnp.zeros((Tp, Bp, 1), jnp.float32).at[:T, :B, 0].set(
        mask.T.astype(jnp.float32))
    h0_p = jnp.zeros((Bp, Hp), jnp.float32).at[:B, :H].set(h0.astype(jnp.float32))
    c0_p = jnp.zeros((Bp, Hp), jnp.float32).at[:B, :H].set(c0.astype(jnp.float32))

    kernel = functools.partial(lstm_chunk_kernel, time_chunk=Tt, seq_len=T)
    state_spec = pl.BlockSpec((TB, Hp), lambda bb, tt: (bb, 0))

    h_f, c_f, hsum, last_h = pl.pallas_call(
        kernel,
        out_shape=tuple(jax.ShapeDtypeStruct((Bp, Hp), jnp.float32)
                        for _ in range(4)),
        grid_spec=pltpu.PrefetchScalarGridSpec(
            num_scalar_prefetch=0,
            grid=(nb, nt),
            in_specs=[
                pl.BlockSpec((Tt, TB, Dp), lambda bb, tt: (tt, bb, 0)),  # x
                pl.BlockSpec((Tt, TB, 1), lambda bb, tt: (tt, bb, 0)),   # mask
                pl.BlockSpec((TB, Hp), lambda bb, tt: (bb, 0)),          # h0
                pl.BlockSpec((TB, Hp), lambda bb, tt: (bb, 0)),          # c0
                pl.BlockSpec((1, G), lambda bb, tt: (0, 0)),             # bias
                pl.BlockSpec(memory_space=pl.ANY),                       # Wx (HBM)
                pl.BlockSpec(memory_space=pl.ANY),                       # Wh (HBM)
            ],
            out_specs=tuple(state_spec for _ in range(4)),
            scratch_shapes=[
                pltpu.VMEM((Dp, G), jnp.bfloat16),     # Wx, single-buffered
                pltpu.VMEM((Hp, G), jnp.bfloat16),     # Wh, single-buffered
                pltpu.SemaphoreType.DMA((2,)),
            ],
        ),
        compiler_params=pltpu.CompilerParams(
            dimension_semantics=("parallel", "arbitrary"),
            vmem_limit_bytes=vmem_limit),
    )(x_p, m_p, h0_p, c0_p, prep.b_p, prep.wx_p, prep.wh_p)

    return (h_f[:B, :H], c_f[:B, :H], hsum[:B, :H], last_h[:B, :H])


def lstm_encoder_forward(x, prev_h, prev_c, params):
    """LSTMEncoder.forward: x (B,D), prev_h/prev_c (B,H) -> (h_t, c_t).

    Single-step path: T=1, Tt=1 -> exactly one fused pallas_call, no
    intermediates.
    """
    prep = _as_prepared(params)
    B = x.shape[0]
    mask = jnp.ones((B, 1), jnp.float32)
    h_f, c_f, _, _ = _lstm_sequence(x[:, None, :], mask, prev_h, prev_c, prep,
                                    time_chunk=1)
    return h_f, c_f


def lstm_encoder_run_all(all_input, mask, params, *, return_average=True,
                         batch_tile=128, time_chunk=8):
    """LSTMEncoder.run_all: all_input (B,T,D), mask (B,T) -> (B,H)."""
    prep = _as_prepared(params)
    B = all_input.shape[0]
    H = prep.hidden_dim
    h0 = jnp.zeros((B, H), jnp.float32)
    c0 = jnp.zeros((B, H), jnp.float32)
    _, _, hsum, last_h = _lstm_sequence(all_input, mask, h0, c0, prep,
                                        batch_tile=batch_tile,
                                        time_chunk=time_chunk)
    if return_average:
        return hsum / jnp.sum(mask, axis=1, keepdims=True)
    return last_h


# --------------------------------------------------------------- reference --

def make_params(key, input_dim, hidden_dim):
    """Init of the 4 gate nn.Linear(D+H -> H) layers, split as Wx/Wh/b."""
    K = input_dim + hidden_dim
    bound = 1.0 / jnp.sqrt(K)
    ks = jax.random.split(key, 8)
    ws = [jax.random.uniform(ks[i], (K, hidden_dim), jnp.float32, -bound, bound)
          for i in range(4)]                         # gate order: i, f, o, z
    bs = [jax.random.uniform(ks[4 + i], (hidden_dim,), jnp.float32, -bound, bound)
          for i in range(4)]
    w = jnp.concatenate(ws, axis=1)                  # (D+H, 4H)
    return w[:input_dim], w[input_dim:], jnp.concatenate(bs)


def reference_step(x, h, c, wx, wh, b):
    H = h.shape[-1]
    g = x @ wx + h @ wh + b
    i_t = jax.nn.sigmoid(g[:, 0 * H:1 * H])
    f_t = jax.nn.sigmoid(g[:, 1 * H:2 * H])
    o_t = jax.nn.sigmoid(g[:, 2 * H:3 * H])
    z_t = jnp.tanh(g[:, 3 * H:4 * H])
    c_t = i_t * z_t + f_t * c
    h_t = o_t * jnp.tanh(c_t)
    return h_t, c_t


def reference_run_all(x_seq, mask, wx, wh, b, return_average=True):
    B, T, _ = x_seq.shape
    H = b.shape[0] // 4
    h = jnp.zeros((B, H)); c = jnp.zeros((B, H))
    hsum = jnp.zeros((B, H)); last = jnp.zeros((B, H))
    for t in range(T):
        h, c = reference_step(x_seq[:, t], h, c, wx, wh, b)
        m = mask[:, t:t + 1]
        hsum = hsum + m * h
        last = (1.0 - m) * last + m * h
    if return_average:
        return hsum / jnp.sum(mask, axis=1, keepdims=True)
    return last


if __name__ == "__main__":
    B, D, H, T = 4, 16, 32, 8
    key = jax.random.PRNGKey(0)
    k_x, k_h, k_c, k_p, k_x2 = jax.random.split(key, 5)

    x_seq = jax.random.normal(k_x, (B, T, D), jnp.float32)
    prev_h = jax.random.normal(k_h, (B, H), jnp.float32)
    prev_c = jax.random.normal(k_c, (B, H), jnp.float32)
    wx, wh, b = make_params(k_p, D, H)
    prepared = prepare_params((wx, wh, b))   # hoisted: once per parameter set

    lengths = jnp.array([T, 5, 3, 6])
    mask = (jnp.arange(T)[None, :] < lengths[:, None]).astype(jnp.float32)

    # --- single step (LSTMEncoder.forward) -----------------------------------
    h_t, c_t = lstm_encoder_forward(x_seq[:, 0], prev_h, prev_c, prepared)
    jax.block_until_ready((h_t, c_t))
    h_r, c_r = reference_step(x_seq[:, 0], prev_h, prev_c, wx, wh, b)
    # bf16 MXU inputs (f32 accumulation) -> loosened tolerance vs f32 reference
    assert jnp.allclose(h_t, h_r, atol=3e-2), "forward h mismatch"
    assert jnp.allclose(c_t, c_r, atol=3e-2), "forward c mismatch"

    # --- fused full sequence (LSTMEncoder.run_all) ----------------------------
    avg = lstm_encoder_run_all(x_seq, mask, prepared, return_average=True)
    last = lstm_encoder_run_all(x_seq, mask, prepared, return_average=False)
    jax.block_until_ready((avg, last))
    avg_ref = reference_run_all(x_seq, mask, wx, wh, b, True)
    last_ref = reference_run_all(x_seq, mask, wx, wh, b, False)
    assert jnp.allclose(avg, avg_ref, atol=5e-2), "run_all average mismatch"
    assert jnp.allclose(last, last_ref, atol=5e-2), "run_all last_h mismatch"

    # --- time chunk that does not divide T (exercises the padding guard) ------
    avg_t3 = lstm_encoder_run_all(x_seq, mask, prepared, return_average=True,
                                  time_chunk=3)
    jax.block_until_ready(avg_t3)
    assert jnp.allclose(avg_t3, avg_ref, atol=5e-2), "chunked run_all mismatch"

    # --- larger batch: exercises >= 2 batch tiles (megacore-parallel axis) ----
    B2 = 40
    x2 = jax.random.normal(k_x2, (B2, T, D), jnp.float32)
    lengths2 = (jnp.arange(B2) % T) + 1
    mask2 = (jnp.arange(T)[None, :] < lengths2[:, None]).astype(jnp.float32)
    avg2 = lstm_encoder_run_all(x2, mask2, prepared, return_average=True)
    jax.block_until_ready(avg2)
    avg2_ref = reference_run_all(x2, mask2, wx, wh, b, True)
    assert jnp.allclose(avg2, avg2_ref, atol=5e-2), "large-batch run_all mismatch"

    print("KERNEL_OK")
</pallas_src>

<mosaic_0001>
module attributes {stable_mosaic.version = 11 : i64} {
  func.func @lstm_chunk_kernel(%arg0: i32, %arg1: i32, %arg2: memref<1x16x16xbf16, #tpu.memory_space<vmem>>, %arg3: memref<1x16x1xf32, #tpu.memory_space<vmem>>, %arg4: memref<16x128xf32, #tpu.memory_space<vmem>>, %arg5: memref<16x128xf32, #tpu.memory_space<vmem>>, %arg6: memref<1x512xf32, #tpu.memory_space<vmem>>, %arg7: memref<16x512xbf16, #tpu.memory_space<any>>, %arg8: memref<128x512xbf16, #tpu.memory_space<any>>, %arg9: memref<16x128xf32, #tpu.memory_space<vmem>>, %arg10: memref<16x128xf32, #tpu.memory_space<vmem>>, %arg11: memref<16x128xf32, #tpu.memory_space<vmem>>, %arg12: memref<16x128xf32, #tpu.memory_space<vmem>>, %arg13: memref<16x512xbf16, #tpu.memory_space<vmem>>, %arg14: memref<128x512xbf16, #tpu.memory_space<vmem>>, %arg15: memref<2x!tpu.dma_semaphore, #tpu.memory_space<semaphore_mem>>) attributes {dimension_semantics = [#tpu.dimension_semantics<parallel>, #tpu.dimension_semantics<arbitrary>], iteration_bounds = array<i64: 1, 1>, scalar_prefetch = 0 : i64, scratch_operands = 3 : i64, tpu.core_type = #tpu.core_type<tc>, window_params = [{transform_indices = @transform_0, window_bounds = array<i64: 1, 16, 16>}, {transform_indices = @transform_1, window_bounds = array<i64: 1, 16, 1>}, {transform_indices = @transform_2, window_bounds = array<i64: 16, 128>}, {transform_indices = @transform_3, window_bounds = array<i64: 16, 128>}, {pipeline_mode = #tpu.pipeline_mode<synchronous>, transform_indices = @transform_4, window_bounds = array<i64: 1, 512>}, {}, {}, {transform_indices = @transform_7, window_bounds = array<i64: 16, 128>}, {transform_indices = @transform_8, window_bounds = array<i64: 16, 128>}, {transform_indices = @transform_9, window_bounds = array<i64: 16, 128>}, {transform_indices = @transform_10, window_bounds = array<i64: 16, 128>}]} {
    %c0_i32 = arith.constant 0 : i32
    %0 = arith.cmpi eq, %arg1, %c0_i32 : i32
    %1 = arith.extui %0 : i1 to i32
    %c0_i32_0 = arith.constant 0 : i32
    %2 = arith.cmpi ne, %1, %c0_i32_0 : i32
    scf.if %2 {
      %c0_i32_33 = arith.constant 0 : i32
      %59 = tpu.memref_slice %arg15[%c0_i32_33] : memref<2x!tpu.dma_semaphore, #tpu.memory_space<semaphore_mem>> -> memref<1x!tpu.dma_semaphore, #tpu.memory_space<semaphore_mem>>
      %60 = tpu.memref_squeeze %59 : memref<1x!tpu.dma_semaphore, #tpu.memory_space<semaphore_mem>> -> memref<!tpu.dma_semaphore, #tpu.memory_space<semaphore_mem>>
      tpu.enqueue_dma source(%arg7 : memref<16x512xbf16, #tpu.memory_space<any>>) target(%arg13 : memref<16x512xbf16, #tpu.memory_space<vmem>>) target_semaphore(%60 : memref<!tpu.dma_semaphore, #tpu.memory_space<semaphore_mem>>)
      %c1_i32 = arith.constant 1 : i32
      %61 = tpu.memref_slice %arg15[%c1_i32] : memref<2x!tpu.dma_semaphore, #tpu.memory_space<semaphore_mem>> -> memref<1x!tpu.dma_semaphore, #tpu.memory_space<semaphore_mem>>
      %62 = tpu.memref_squeeze %61 : memref<1x!tpu.dma_semaphore, #tpu.memory_space<semaphore_mem>> -> memref<!tpu.dma_semaphore, #tpu.memory_space<semaphore_mem>>
      tpu.enqueue_dma source(%arg8 : memref<128x512xbf16, #tpu.memory_space<any>>) target(%arg14 : memref<128x512xbf16, #tpu.memory_space<vmem>>) target_semaphore(%62 : memref<!tpu.dma_semaphore, #tpu.memory_space<semaphore_mem>>)
      %c0_i32_34 = arith.constant 0 : i32
      %63 = tpu.memref_slice %arg15[%c0_i32_34] : memref<2x!tpu.dma_semaphore, #tpu.memory_space<semaphore_mem>> -> memref<1x!tpu.dma_semaphore, #tpu.memory_space<semaphore_mem>>
      %64 = tpu.memref_squeeze %63 : memref<1x!tpu.dma_semaphore, #tpu.memory_space<semaphore_mem>> -> memref<!tpu.dma_semaphore, #tpu.memory_space<semaphore_mem>>
      tpu.wait_dma2 semaphore(%64 : memref<!tpu.dma_semaphore, #tpu.memory_space<semaphore_mem>>) src(%arg7 : memref<16x512xbf16, #tpu.memory_space<any>>) dst(%arg13 : memref<16x512xbf16, #tpu.memory_space<vmem>>)
      %c1_i32_35 = arith.constant 1 : i32
      %65 = tpu.memref_slice %arg15[%c1_i32_35] : memref<2x!tpu.dma_semaphore, #tpu.memory_space<semaphore_mem>> -> memref<1x!tpu.dma_semaphore, #tpu.memory_space<semaphore_mem>>
      %66 = tpu.memref_squeeze %65 : memref<1x!tpu.dma_semaphore, #tpu.memory_space<semaphore_mem>> -> memref<!tpu.dma_semaphore, #tpu.memory_space<semaphore_mem>>
      tpu.wait_dma2 semaphore(%66 : memref<!tpu.dma_semaphore, #tpu.memory_space<semaphore_mem>>) src(%arg8 : memref<128x512xbf16, #tpu.memory_space<any>>) dst(%arg14 : memref<128x512xbf16, #tpu.memory_space<vmem>>)
      %c0_36 = arith.constant 0 : index
      %c0_37 = arith.constant 0 : index
      %67 = vector.load %arg4[%c0_36, %c0_37] : memref<16x128xf32, #tpu.memory_space<vmem>>, vector<16x128xf32>
      %c0_38 = arith.constant 0 : index
      %c0_39 = arith.constant 0 : index
      %68 = vector.load %arg9[%c0_38, %c0_39] : memref<16x128xf32, #tpu.memory_space<vmem>>, vector<16x128xf32>
      tpu.vector_store %arg9[%c0_38, %c0_39], %67 {strides = array<i32>} : memref<16x128xf32, #tpu.memory_space<vmem>>, vector<16x128xf32>,
      %c0_40 = arith.constant 0 : index
      %c0_41 = arith.constant 0 : index
      %69 = vector.load %arg5[%c0_40, %c0_41] : memref<16x128xf32, #tpu.memory_space<vmem>>, vector<16x128xf32>
      %c0_42 = arith.constant 0 : index
      %c0_43 = arith.constant 0 : index
      %70 = vector.load %arg10[%c0_42, %c0_43] : memref<16x128xf32, #tpu.memory_space<vmem>>, vector<16x128xf32>
      tpu.vector_store %arg10[%c0_42, %c0_43], %69 {strides = array<i32>} : memref<16x128xf32, #tpu.memory_space<vmem>>, vector<16x128xf32>,
      %cst_44 = arith.constant 0.000000e+00 : f32
      %71 = vector.broadcast %cst_44 : f32 to vector<16x128xf32>
      %c0_45 = arith.constant 0 : index
      %c0_46 = arith.constant 0 : index
      %72 = vector.load %arg11[%c0_45, %c0_46] : memref<16x128xf32, #tpu.memory_space<vmem>>, vector<16x128xf32>
      tpu.vector_store %arg11[%c0_45, %c0_46], %71 {strides = array<i32>} : memref<16x128xf32, #tpu.memory_space<vmem>>, vector<16x128xf32>,
      %cst_47 = arith.constant 0.000000e+00 : f32
      %73 = vector.broadcast %cst_47 : f32 to vector<16x128xf32>
      %c0_48 = arith.constant 0 : index
      %c0_49 = arith.constant 0 : index
      %74 = vector.load %arg12[%c0_48, %c0_49] : memref<16x128xf32, #tpu.memory_space<vmem>>, vector<16x128xf32>
      tpu.vector_store %arg12[%c0_48, %c0_49], %73 {strides = array<i32>} : memref<16x128xf32, #tpu.memory_space<vmem>>, vector<16x128xf32>,
    } else {
    }
    %c0 = arith.constant 0 : index
    %c0_1 = arith.constant 0 : index
    %3 = vector.load %arg13[%c0, %c0_1] : memref<16x512xbf16, #tpu.memory_space<vmem>>, vector<16x512xbf16>
    %c0_2 = arith.constant 0 : index
    %c0_3 = arith.constant 0 : index
    %4 = vector.load %arg14[%c0_2, %c0_3] : memref<128x512xbf16, #tpu.memory_space<vmem>>, vector<128x512xbf16>
    %c0_4 = arith.constant 0 : index
    %c0_5 = arith.constant 0 : index
    %5 = vector.load %arg6[%c0_4, %c0_5] : memref<1x512xf32, #tpu.memory_space<vmem>>, vector<1x512xf32>
    %c0_6 = arith.constant 0 : index
    %c0_7 = arith.constant 0 : index
    %6 = vector.load %arg9[%c0_6, %c0_7] : memref<16x128xf32, #tpu.memory_space<vmem>>, vector<16x128xf32>
    %c0_8 = arith.constant 0 : index
    %c0_9 = arith.constant 0 : index
    %7 = vector.load %arg10[%c0_8, %c0_9] : memref<16x128xf32, #tpu.memory_space<vmem>>, vector<16x128xf32>
    %c0_10 = arith.constant 0 : index
    %c0_11 = arith.constant 0 : index
    %8 = vector.load %arg11[%c0_10, %c0_11] : memref<16x128xf32, #tpu.memory_space<vmem>>, vector<16x128xf32>
    %c0_12 = arith.constant 0 : index
    %c0_13 = arith.constant 0 : index
    %9 = vector.load %arg12[%c0_12, %c0_13] : memref<16x128xf32, #tpu.memory_space<vmem>>, vector<16x128xf32>
    %c0_14 = arith.constant 0 : index
    %c0_15 = arith.constant 0 : index
    %c0_16 = arith.constant 0 : index
    %10 = vector.load %arg2[%c0_14, %c0_15, %c0_16] : memref<1x16x16xbf16, #tpu.memory_space<vmem>>, vector<1x16x16xbf16>
    %11 = vector.shape_cast %10 : vector<1x16x16xbf16> to vector<16x16xbf16>
    %cst = arith.constant dense<0.000000e+00> : vector<16x512xf32>
    %12 = tpu.matmul %11, %3, %cst {dimension_numbers = #tpu.dot_dimension_numbers<[1], [0], [0], [1], [0, 0, 1, 1], [], []>} : vector<16x16xbf16>, vector<16x512xbf16>, vector<16x512xf32> -> vector<16x512xf32>
    %13 = arith.truncf %6 : vector<16x128xf32> to vector<16x128xbf16>
    %cst_17 = arith.constant dense<0.000000e+00> : vector<16x512xf32>
    %14 = tpu.matmul %13, %4, %cst_17 {dimension_numbers = #tpu.dot_dimension_numbers<[1], [0], [0], [1], [0, 0, 1, 1], [], []>} : vector<16x128xbf16>, vector<128x512xbf16>, vector<16x512xf32> -> vector<16x512xf32>
    %15 = arith.addf %12, %14 : vector<16x512xf32>
    %16 = vector.broadcast %5 : vector<1x512xf32> to vector<16x512xf32>
    %17 = arith.addf %15, %16 : vector<16x512xf32>
    %18 = vector.extract_strided_slice %17 {offsets = [0, 0], sizes = [16, 128], strides = [1, 1]} : vector<16x512xf32> to vector<16x128xf32>
    %19 = arith.negf %18 : vector<16x128xf32>
    %20 = math.exp %19 : vector<16x128xf32>
    %cst_18 = arith.constant 1.000000e+00 : f32
    %21 = vector.broadcast %cst_18 : f32 to vector<16x128xf32>
    %22 = arith.addf %21, %20 : vector<16x128xf32>
    %23 = arith.divf %21, %22 : vector<16x128xf32>
    %24 = vector.extract_strided_slice %17 {offsets = [0, 128], sizes = [16, 128], strides = [1, 1]} : vector<16x512xf32> to vector<16x128xf32>
    %25 = arith.negf %24 : vector<16x128xf32>
    %26 = math.exp %25 : vector<16x128xf32>
    %cst_19 = arith.constant 1.000000e+00 : f32
    %27 = vector.broadcast %cst_19 : f32 to vector<16x128xf32>
    %28 = arith.addf %27, %26 : vector<16x128xf32>
    %29 = arith.divf %27, %28 : vector<16x128xf32>
    %30 = vector.extract_strided_slice %17 {offsets = [0, 256], sizes = [16, 128], strides = [1, 1]} : vector<16x512xf32> to vector<16x128xf32>
    %31 = arith.negf %30 : vector<16x128xf32>
    %32 = math.exp %31 : vector<16x128xf32>
    %cst_20 = arith.constant 1.000000e+00 : f32
    %33 = vector.broadcast %cst_20 : f32 to vector<16x128xf32>
    %34 = arith.addf %33, %32 : vector<16x128xf32>
    %35 = arith.divf %33, %34 : vector<16x128xf32>
    %36 = vector.extract_strided_slice %17 {offsets = [0, 384], sizes = [16, 128], strides = [1, 1]} : vector<16x512xf32> to vector<16x128xf32>
    %37 = math.tanh %36 : vector<16x128xf32>
    %38 = arith.mulf %23, %37 : vector<16x128xf32>
    %39 = arith.mulf %29, %7 : vector<16x128xf32>
    %40 = arith.addf %38, %39 : vector<16x128xf32>
    %41 = math.tanh %40 : vector<16x128xf32>
    %42 = arith.mulf %35, %41 : vector<16x128xf32>
    %c0_21 = arith.constant 0 : index
    %c0_22 = arith.constant 0 : index
    %c0_23 = arith.constant 0 : index
    %43 = vector.load %arg3[%c0_21, %c0_22, %c0_23] : memref<1x16x1xf32, #tpu.memory_space<vmem>>, vector<1x16x1xf32>
    %44 = vector.shape_cast %43 : vector<1x16x1xf32> to vector<16x1xf32>
    %45 = vector.broadcast %44 : vector<16x1xf32> to vector<16x128xf32>
    %46 = arith.mulf %45, %42 : vector<16x128xf32>
    %47 = arith.addf %8, %46 : vector<16x128xf32>
    %cst_24 = arith.constant 1.000000e+00 : f32
    %48 = vector.broadcast %cst_24 : f32 to vector<16x1xf32>
    %49 = arith.subf %48, %44 : vector<16x1xf32>
    %50 = vector.broadcast %49 : vector<16x1xf32> to vector<16x128xf32>
    %51 = arith.mulf %50, %9 : vector<16x128xf32>
    %52 = vector.broadcast %44 : vector<16x1xf32> to vector<16x128xf32>
    %53 = arith.mulf %52, %42 : vector<16x128xf32>
    %54 = arith.addf %51, %53 : vector<16x128xf32>
    %c0_25 = arith.constant 0 : index
    %c0_26 = arith.constant 0 : index
    %55 = vector.load %arg9[%c0_25, %c0_26] : memref<16x128xf32, #tpu.memory_space<vmem>>, vector<16x128xf32>
    tpu.vector_store %arg9[%c0_25, %c0_26], %42 {strides = array<i32>} : memref<16x128xf32, #tpu.memory_space<vmem>>, vector<16x128xf32>,
    %c0_27 = arith.constant 0 : index
    %c0_28 = arith.constant 0 : index
    %56 = vector.load %arg10[%c0_27, %c0_28] : memref<16x128xf32, #tpu.memory_space<vmem>>, vector<16x128xf32>
    tpu.vector_store %arg10[%c0_27, %c0_28], %40 {strides = array<i32>} : memref<16x128xf32, #tpu.memory_space<vmem>>, vector<16x128xf32>,
    %c0_29 = arith.constant 0 : index
    %c0_30 = arith.constant 0 : index
    %57 = vector.load %arg11[%c0_29, %c0_30] : memref<16x128xf32, #tpu.memory_space<vmem>>, vector<16x128xf32>
    tpu.vector_store %arg11[%c0_29, %c0_30], %47 {strides = array<i32>} : memref<16x128xf32, #tpu.memory_space<vmem>>, vector<16x128xf32>,
    %c0_31 = arith.constant 0 : index
    %c0_32 = arith.constant 0 : index
    %58 = vector.load %arg12[%c0_31, %c0_32] : memref<16x128xf32, #tpu.memory_space<vmem>>, vector<16x128xf32>
    tpu.vector_store %arg12[%c0_31, %c0_32], %54 {strides = array<i32>} : memref<16x128xf32, #tpu.memory_space<vmem>>, vector<16x128xf32>,
    return
  }
  func.func @transform_0(%arg0: i32, %arg1: i32) -> (i32, i32, i32) {
    %c0_i32 = arith.constant 0 : i32
    %c0_i32_0 = arith.constant 0 : i32
    return %arg1, %arg0, %c0_i32 : i32, i32, i32
  }
  func.func @transform_1(%arg0: i32, %arg1: i32) -> (i32, i32, i32) {
    %c0_i32 = arith.constant 0 : i32
    %c0_i32_0 = arith.constant 0 : i32
    return %arg1, %arg0, %c0_i32 : i32, i32, i32
  }
  func.func @transform_2(%arg0: i32, %arg1: i32) -> (i32, i32) {
    %c0_i32 = arith.constant 0 : i32
    %c0_i32_0 = arith.constant 0 : i32
    return %arg0, %c0_i32 : i32, i32
  }
  func.func @transform_3(%arg0: i32, %arg1: i32) -> (i32, i32) {
    %c0_i32 = arith.constant 0 : i32
    %c0_i32_0 = arith.constant 0 : i32
    return %arg0, %c0_i32 : i32, i32
  }
  func.func @transform_4(%arg0: i32, %arg1: i32) -> (i32, i32) {
    %c0_i32 = arith.constant 0 : i32
    %c0_i32_0 = arith.constant 0 : i32
    %c0_i32_1 = arith.constant 0 : i32
    return %c0_i32, %c0_i32_0 : i32, i32
  }
  func.func @transform_7(%arg0: i32, %arg1: i32) -> (i32, i32) {
    %c0_i32 = arith.constant 0 : i32
    %c0_i32_0 = arith.constant 0 : i32
    return %arg0, %c0_i32 : i32, i32
  }
  func.func @transform_8(%arg0: i32, %arg1: i32) -> (i32, i32) {
    %c0_i32 = arith.constant 0 : i32
    %c0_i32_0 = arith.constant 0 : i32
    return %arg0, %c0_i32 : i32, i32
  }
  func.func @transform_9(%arg0: i32, %arg1: i32) -> (i32, i32) {
    %c0_i32 = arith.constant 0 : i32
    %c0_i32_0 = arith.constant 0 : i32
    return %arg0, %c0_i32 : i32, i32
  }
  func.func @transform_10(%arg0: i32, %arg1: i32) -> (i32, i32) {
    %c0_i32 = arith.constant 0 : i32
    %c0_i32_0 = arith.constant 0 : i32
    return %arg0, %c0_i32 : i32, i32
  }
}

</mosaic_0001>

<bundles_post_ra>
// kernel: tpu_custom_call.1
= control target key start
LH: loop header
LB: loop body
LE: loop exit
PB: predicated region body
PF: predicated region fallthrough
CT: control target
= control target key end

     0   :  { %16 = vsyncpa [#allocation6], 0  ;;  %s1178_s0 = inlined_call_operand.hbm [shape: bf16[1,16,16], index: 0, kind: input, shape index: {}]   ;;  %s1179_s1 = inlined_call_operand.vmem [shape: f32[1,16,1], index: 1, kind: input, shape index: {}]   ;;  %s1180_s2 = inlined_call_operand.hbm [shape: f32[16,128], index: 2, kind: input, shape index: {}]   ;;  %s1181_s3 = inlined_call_operand.hbm [shape: f32[16,128], index: 3, kind: input, shape index: {}]   ;;  %s1182_s4 = inlined_call_operand.hbm [shape: f32[1,512], index: 4, kind: input, shape index: {}]   ;;  %s1183_s5 = inlined_call_operand.vmem [shape: bf16[16,512], index: 5, kind: input, shape index: {}]   ;;  %s1184_s6 = inlined_call_operand.hbm [shape: bf16[128,512], index: 6, kind: input, shape index: {}]   ;;  %s1185_s7 = inlined_call_operand.hbm [shape: f32[16,128], index: 7, kind: output, shape index: {0}]   ;;  %s1186_s8 = inlined_call_operand.hbm [shape: f32[16,128], index: 8, kind: output, shape index: {1}]   ;;  %s1187_s9 = inlined_call_operand.hbm [shape: f32[16,128], index: 9, kind: output, shape index: {2}]   ;;  %s1188_s10 = inlined_call_operand.hbm [shape: f32[16,128], index: 10, kind: output, shape index: {3}]  }
   0x1   :  { %17 = vsyncpa [#allocation9], 0 }
   0x2   :  { %18 = vsyncpa [#allocation12], 0 }
   0x3   :  { %19 = vsyncpa [#allocation7], 0 }
   0x4   :  { %20 = vsyncpa [#allocation15], 0 }
   0x5   :  { %21 = vsyncpa [#allocation18], 0  ;;  %s933_s13 = smov [#allocation8]   ;;  %s741_s17 = scalar_lea.hbm %s1180_s2, 256 }
   0x6   :  { %s41_s14 = sshll.u32 %s933_s13, 4  ;;  %p742_p0 = scmp.ne.s32.totalorder %s1180_s2, %s741_s17  ;;  %s42_s14 = int_to_ptr.vmem [resolvable:$true] %s41_s14 }
   0x7   :  { %p745_p1 = scmp.lt.u32.totalorder %s741_s17, %s1180_s2 }
   0x9   :  { %p747_p2 = pnand %p745_p1, %p742_p0 }
   0xb   :  { %750 = shalt.err (!%p747_p2)
}
   0xc   :  { %s751_s22 = scalar_lea.vmem %s42_s14, 256  ;;  %p756_p4 = scmp.lt.s32.totalorder %s42_s14, %s42_s14 }
   0xd   :  { %p752_p3 = scmp.ne.s32.totalorder %s42_s14, %s751_s22  ;;  %p757_p5 = scmp.lt.s32.totalorder %s751_s22, %s751_s22 }
   0xf   :  { %p758_p6 = por %p757_p5, %p756_p4 }
  0x11   :  { %p759_p7 = pnand %p758_p6, %p752_p3 }
  0x13   :  { %762 = shalt.err (!%p759_p7)
}
  0x14   :  { %s934_s23 = smov 128   ;;  %s935_s24 = smov 8  }
  0x15   :  { %47 = dma.hbm_to_vmem [thread:$0]  %s1180_s2, 256, %s42_s14, [#allocation9], %s934_s23, %s934_s23, %s935_s24  }
  0x16   :  { %s936_s27 = smov [#allocation5]   ;;  %s763_s11 = scalar_lea.hbm %s1178_s0, 128 }
  0x17   :  { %s27_s28 = sshll.u32 %s936_s27, 4  ;;  %p764_p8 = scmp.ne.s32.totalorder %s1178_s0, %s763_s11  ;;  %s28_s28 = int_to_ptr.vmem [resolvable:$true] %s27_s28 }
  0x18   :  { %p767_p9 = scmp.lt.u32.totalorder %s763_s11, %s1178_s0 }
  0x1a   :  { %p769_p10 = pnand %p767_p9, %p764_p8 }
  0x1c   :  { %772 = shalt.err (!%p769_p10)
}
  0x1d   :  { %s773_s17 = scalar_lea.vmem %s28_s28, 128  ;;  %p778_p12 = scmp.lt.s32.totalorder %s28_s28, %s28_s28 }
  0x1e   :  { %p774_p11 = scmp.ne.s32.totalorder %s28_s28, %s773_s17  ;;  %p779_p13 = scmp.lt.s32.totalorder %s773_s17, %s773_s17 }
  0x20   :  { %p780_p0 = por %p779_p13, %p778_p12 }
  0x22   :  { %p781_p1 = pnand %p780_p0, %p774_p11 }
  0x24   :  { %784 = shalt.err (!%p781_p1)
}
  0x25   :  { %s937_s2 = smov 64   ;;  %s938_s14 = smov 4  }
  0x26   :  { %33 = dma.hbm_to_vmem [thread:$0]  %s1178_s0, 128, %s28_s28, [#allocation6], %s937_s2, %s937_s2, %s938_s14  }
  0x27   :  { %s939_s20 = smov [#allocation10]   ;;  %s940_s22 = smov [#allocation11]  }
  0x28   :  { %s53_s21 = sshll.u32 %s939_s20, 4  ;;  %s66_s25 = sshll.u32 %s940_s22, 4  ;;  %s54_s21 = int_to_ptr.vmem [resolvable:$true] %s53_s21  ;;  %s67_s25 = int_to_ptr.vmem [resolvable:$true] %s66_s25 }
  0x29   :  { %s785_s29 = scalar_lea.hbm %s1181_s3, 256 }
  0x2a   :  { %p786_p2 = scmp.ne.s32.totalorder %s1181_s3, %s785_s29  ;;  %p789_p3 = scmp.lt.u32.totalorder %s785_s29, %s1181_s3 }
  0x2c   :  { %p791_p4 = pnand %p789_p3, %p786_p2 }
  0x2e   :  { %794 = shalt.err (!%p791_p4)
}
  0x2f   :  { %s795_s0 = scalar_lea.vmem %s54_s21, 256  ;;  %p800_p6 = scmp.lt.s32.totalorder %s54_s21, %s54_s21 }
  0x30   :  { %p796_p5 = scmp.ne.s32.totalorder %s54_s21, %s795_s0  ;;  %p801_p7 = scmp.lt.s32.totalorder %s795_s0, %s795_s0 }
  0x32   :  { %p802_p8 = por %p801_p7, %p800_p6 }
  0x34   :  { %p803_p9 = pnand %p802_p8, %p796_p5 }
  0x36   :  { %806 = shalt.err (!%p803_p9)
}
  0x37   :  { %59 = dma.hbm_to_vmem [thread:$0]  %s1181_s3, 256, %s54_s21, [#allocation9], %s934_s23, %s934_s23, %s935_s24  }
  0x38   :  { %s807_s2 = scalar_lea.hbm %s1182_s4, 64 }
  0x39   :  { %p808_p10 = scmp.ne.s32.totalorder %s1182_s4, %s807_s2  ;;  %p811_p11 = scmp.lt.u32.totalorder %s807_s2, %s1182_s4 }
  0x3b   :  { %p813_p12 = pnand %p811_p11, %p808_p10 }
  0x3d   :  { %816 = shalt.err (!%p813_p12)
}
  0x3e   :  { %s817_s22 = scalar_lea.vmem %s67_s25, 64  ;;  %p822_p0 = scmp.lt.s32.totalorder %s67_s25, %s67_s25 }
  0x3f   :  { %p818_p13 = scmp.ne.s32.totalorder %s67_s25, %s817_s22  ;;  %p823_p1 = scmp.lt.s32.totalorder %s817_s22, %s817_s22 }
  0x41   :  { %p824_p2 = por %p823_p1, %p822_p0 }
  0x43   :  { %p825_p3 = pnand %p824_p2, %p818_p13 }
  0x45   :  { %828 = shalt.err (!%p825_p3)
}
  0x46   :  { %69 = dma.hbm_to_vmem [thread:$0]  %s1182_s4, 64, %s67_s25, [#allocation12]  }
  0x47   :  { %917 = dma.done.wait [#allocation6], 128  }
  0x48   :  { %918 = vsyncadd [#allocation6], 4294967168 }
  0x49   :  { %919 = dma.done.wait [#allocation9], 512  }
  0x4a   :  { %920 = vsyncadd [#allocation9], 4294966784 }
  0x4b   :  { %921 = dma.done.wait [#allocation12], 64  }
  0x4c   :  { %922 = vsyncadd [#allocation12], 4294967232 }
  0x4d   :  { %v104_v0 = vld [vmem:[%s1183_s5] sm:$0xf]  ;;  %v106_v1 = vld [vmem:[%s1183_s5 + $0x10] sm:$0xf]  ;;  %v108_v2 = vld [vmem:[%s1183_s5 + $0x4] sm:$0xf] }
  0x4e   :  { %105 = vst [vmem:[#allocation2] sm:$0xf] %v104_v0  ;;  %107 = vst [vmem:[#allocation2 + $0x4] sm:$0xf] %v106_v1  ;;  %v110_v3 = vld [vmem:[%s1183_s5 + $0x14] sm:$0xf] }
  0x4f   :  { %109 = vst [vmem:[#allocation2 + $0x8] sm:$0xf] %v108_v2  ;;  %v112_v4 = vld [vmem:[%s1183_s5 + $0x8] sm:$0xf]  ;;  %v114_v5 = vld [vmem:[%s1183_s5 + $0x18] sm:$0xf] }
  0x50   :  { %111 = vst [vmem:[#allocation2 + $0xc] sm:$0xf] %v110_v3  ;;  %113 = vst [vmem:[#allocation2 + $0x10] sm:$0xf] %v112_v4  ;;  %v116_v6 = vld [vmem:[%s1183_s5 + $0xc] sm:$0xf] }
  0x51   :  { %115 = vst [vmem:[#allocation2 + $0x14] sm:$0xf] %v114_v5  ;;  %v118_v7 = vld [vmem:[%s1183_s5 + $0x1c] sm:$0xf]  ;;  %117 = vst [vmem:[#allocation2 + $0x18] sm:$0xf] %v116_v6 }
  0x52   :  { %119 = vst [vmem:[#allocation2 + $0x1c] sm:$0xf] %v118_v7 }
  0x53   :  { %166 = vsyncadd [#allocation4], 512  ;;  %s172_s18 = sld [smem:[#allocation0]]   ;;  %s941_s19 = smov [#allocation3]  }
  0x54   :  { %s180_s20 = sshll.u32 %s941_s19, 4  ;;  %s942_s22 = smov 512   ;;  %s181_s20 = int_to_ptr.vmem [resolvable:$true] %s180_s20 }
  0x55   :  { %184 = sst [smem:[#allocation21]] %s942_s22  ;;  %s943_s3 = smov 4  }
  0x56   :  { %186 = sst [smem:[#allocation21 + $0x1]] %s942_s22  ;;  %s944_s21 = smov 64  }
  0x57   :  { %188 = sst [smem:[#allocation21 + $0x2]] %s943_s3  ;;  %s945_s27 = smov 128  }
  0x58   :  { %190 = sst [smem:[#allocation21 + $0x3]] %s944_s21  ;;  %s946_s30 = smov 2  }
  0x59   :  { %s662_s26 = sshll.u32 %s172_s18, 26  ;;  %192 = sst [smem:[#allocation21 + $0x4]] %s945_s27 }
  0x5a   :  { %s663_s29 = sadd.s32 134217728, %s662_s26  ;;  %194 = sst [smem:[#allocation21 + $0x5]] %s946_s30 }
  0x5b   :  { %s947_s5 = smov 256   ;;  %198 = sst [smem:[#allocation21 + $0x7]] %s944_s21 }
  0x5c   :  { %196 = sst [smem:[#allocation21 + $0x6]] %s947_s5  ;;  %s948_s11 = smov [#allocation4 + $0x1]  }
  0x5d   :  { %200 = sst [smem:[#allocation21 + $0x8]] %s943_s3  ;;  %s949_s12 = smov [#allocation20]  }
  0x5e   :  { %202 = dma.general %s1184_s6, 4096, %s181_s20, %s948_s11, %s949_s12, [#allocation21], %s663_s29, 0  }
  0x5f   :  { %923 = dma.done.wait [#allocation4], 512 }
  0x60   :  { %924 = vsyncadd [#allocation4], 4294966784 }
  0x61   :  { %925 = dma.done.wait [#allocation4 + $0x1], 4096 }
  0x62   :  { %926 = vsyncadd [#allocation4 + $0x1], 4294963200  ;;  %v950_v8 = vmov 0.0   ;;  %v211_v9 = vld [vmem:[#allocation8] sm:$0xff]  ;;  %v212_v10 = vld [vmem:[#allocation8 + $0x8] sm:$0xff]  ;;  %v951_v23 = vmov 0   ;;  %v453_v58 = vlaneseq }
  0x63   :  { %219 = vst [vmem:[#allocation16] sm:$0xff] %v950_v8  ;;  %220 = vst [vmem:[#allocation16 + $0x8] sm:$0xff] %v950_v8  ;;  %v215_v11 = vld [vmem:[#allocation10] sm:$0xff]  ;;  %v216_v12 = vld [vmem:[#allocation10 + $0x8] sm:$0xff]  ;;  %303 = vmatprep.mubr.bf16.mxu0 %v951_v23  ;;  %346 = vmatprep.mubr.bf16.mxu1 %v951_v23  ;;  %vm362_vm0 = vcmask 130048  }
  0x64   :  { %221 = vst [vmem:[#allocation17] sm:$0xff] %v950_v8  ;;  %222 = vst [vmem:[#allocation17 + $0x8] sm:$0xff] %v950_v8  ;;  %v228_v13 = vld [vmem:[#allocation3 + $0x8] sm:$0xff]  ;;  %v227_v14 = vld [vmem:[#allocation3] sm:$0xff]  ;;  %707 = vset.pattern.permute.xlu1 %v951_v23  ;;  %706 = vset.pattern.permute.xlu0 %v951_v23  ;;  %v454_v59 = vshrl.u32 %v453_v58, 7 }
  0x65   :  { %213 = vst [vmem:[#allocation13] sm:$0xff] %v211_v9  ;;  %214 = vst [vmem:[#allocation13 + $0x8] sm:$0xff] %v212_v10  ;;  %v230_v15 = vld [vmem:[#allocation3 + $0x18] sm:$0xff]  ;;  %271 = vmatprep.subr.bf16.mxu0 %v228_v13  ;;  %v229_v16 = vld [vmem:[#allocation3 + $0x10] sm:$0xff] }
  0x66   :  { %217 = vst [vmem:[#allocation14] sm:$0xff] %v215_v11  ;;  %218 = vst [vmem:[#allocation14 + $0x8] sm:$0xff] %v216_v12  ;;  %314 = vmatprep.subr.bf16.mxu1 %v230_v15  ;;  %v232_v17 = vld [vmem:[#allocation3 + $0x28] sm:$0xff]  ;;  %272 = vmatpush1.bf16.msra.mxu0 %v227_v14  ;;  %v234_v18 = vld [vmem:[#allocation3 + $0x38] sm:$0xff]  ;;  %v455_v60 = vsub.s32 0, %v454_v59  ;;  %v459_v62 = vsub.s32 1, %v454_v59 }
  0x67   :  { %315 = vmatpush1.bf16.msra.mxu1 %v229_v16  ;;  %273 = vmatprep.subr.bf16.mxu0 %v232_v17  ;;  %v231_v19 = vld [vmem:[#allocation3 + $0x20] sm:$0xff]  ;;  %v233_v20 = vld [vmem:[#allocation3 + $0x30] sm:$0xff]  ;;  %v236_v21 = vld [vmem:[#allocation3 + $0x48] sm:$0xff]  ;;  %v463_v3 = vsub.s32 2, %v454_v59  ;;  %v467_v12 = vsub.s32 3, %v454_v59 }
  0x68   :  { %316 = vmatprep.subr.bf16.mxu1 %v234_v18  ;;  %v238_v22 = vld [vmem:[#allocation3 + $0x58] sm:$0xff]  ;;  %v235_v24 = vld [vmem:[#allocation3 + $0x40] sm:$0xff]  ;;  %v237_v25 = vld [vmem:[#allocation3 + $0x50] sm:$0xff] }
  0x69   :  { %v240_v26 = vld [vmem:[#allocation3 + $0x68] sm:$0xff]  ;;  %v242_v27 = vld [vmem:[#allocation3 + $0x78] sm:$0xff]  ;;  %v239_v28 = vld [vmem:[#allocation3 + $0x60] sm:$0xff] }
  0x6a   :  { %274 = vmatpush1.bf16.msra.mxu0 %v231_v19  ;;  %v241_v29 = vld [vmem:[#allocation3 + $0x70] sm:$0xff]  ;;  %v244_v30 = vld [vmem:[#allocation3 + $0x88] sm:$0xff]  ;;  %v246_v31 = vld [vmem:[#allocation3 + $0x98] sm:$0xff] }
  0x6b   :  { %317 = vmatpush1.bf16.msra.mxu1 %v233_v20  ;;  %275 = vmatprep.subr.bf16.mxu0 %v236_v21  ;;  %v529_v32 = vld [vmem:[%s1179_s1] sm:$0xff]  ;;  %v530_v34 = vld [vmem:[%s1179_s1 + $0x8] sm:$0xff]  ;;  %v245_v36 = vld [vmem:[#allocation3 + $0x90] sm:$0xff]  ;;  %s952_s1 = smov [#allocation14]  }
  0x6c   :  { %318 = vmatprep.subr.bf16.mxu1 %v238_v22  ;;  %v545_v33 = vsub.f32 1.0, %v529_v32  ;;  %v243_v35 = vld [vmem:[#allocation3 + $0x80] sm:$0xff]  ;;  %v248_v37 = vld [vmem:[#allocation3 + $0xa8] sm:$0xff]  ;;  %v250_v38 = vld [vmem:[#allocation3 + $0xb8] sm:$0xff]  ;;  %533 = vperm.xlu0 %706, %v529_v32   ;;  %v546_v39 = vsub.f32 1.0, %v530_v34  ;;  %s586_s15 = sshll.u32 %s952_s1, 4  ;;  %s587_s15 = int_to_ptr.vmem [resolvable:$true] %s586_s15 }
  0x6d   :  { %v247_v40 = vld [vmem:[#allocation3 + $0xa0] sm:$0xff]  ;;  %v249_v41 = vld [vmem:[#allocation3 + $0xb0] sm:$0xff]  ;;  %v252_v42 = vld [vmem:[#allocation3 + $0xc8] sm:$0xff]  ;;  %s829_s16 = scalar_lea.vmem %s587_s15, 256  ;;  %p834_p5 = scmp.lt.s32.totalorder %s587_s15, %s587_s15 }
  0x6e   :  { %276 = vmatpush1.bf16.msra.mxu0 %v235_v24  ;;  %549 = vperm.xlu1 %707, %v545_v33   ;;  %v254_v43 = vld [vmem:[#allocation3 + $0xd8] sm:$0xff]  ;;  %v251_v44 = vld [vmem:[#allocation3 + $0xc0] sm:$0xff]  ;;  %v253_v45 = vld [vmem:[#allocation3 + $0xd0] sm:$0xff]  ;;  %p830_p4 = scmp.ne.s32.totalorder %s587_s15, %s829_s16  ;;  %p835_p6 = scmp.lt.s32.totalorder %s829_s16, %s829_s16 }
  0x6f   :  { %319 = vmatpush1.bf16.msra.mxu1 %v237_v25  ;;  %277 = vmatprep.subr.bf16.mxu0 %v240_v26  ;;  %v256_v46 = vld [vmem:[#allocation3 + $0xe8] sm:$0xff]  ;;  %v258_v47 = vld [vmem:[#allocation3 + $0xf8] sm:$0xff]  ;;  %v255_v50 = vld [vmem:[#allocation3 + $0xe0] sm:$0xff] }
  0x70   :  { %320 = vmatprep.subr.bf16.mxu1 %v242_v27  ;;  %538 = vperm.xlu0 %706, %v530_v34   ;;  %v260_v48 = vld [vmem:[#allocation13] sm:$0xff]  ;;  %v261_v49 = vld [vmem:[#allocation13 + $0x8] sm:$0xff]  ;;  %v223_v55 = vld [vmem:[#allocation2] sm:$0xff]  ;;  %p836_p7 = por %p835_p6, %p834_p5 }
  0x71   :  { %v257_v51 = vld [vmem:[#allocation3 + $0xf0] sm:$0xff]  ;;  %v224_v52 = vld [vmem:[#allocation2 + $0x8] sm:$0xff]  ;;  %v226_v53 = vld [vmem:[#allocation2 + $0x18] sm:$0xff]  ;;  %v270_v54 = vpack.c.bf16 %v261_v49, %v260_v48 }
  0x72   :  { %278 = vmatpush1.bf16.msra.mxu0 %v239_v28  ;;  %554 = vperm.xlu1 %707, %v546_v39   ;;  %v225_v56 = vld [vmem:[#allocation2 + $0x10] sm:$0xff]  ;;  %v708_v57 = vld [vmem:[#allocation5] sm:$0xff]   ;;  %v259_v61 = vld [vmem:[#allocation11] sm:$0xf]  ;;  %p837_p8 = pnand %p836_p7, %p830_p4 }
  0x73   :  { %321 = vmatpush1.bf16.msra.mxu1 %v241_v29  ;;  %279 = vmatprep.subr.bf16.mxu0 %v244_v30  ;;  %v456_v63 = vrot.slane %v259_v61, %v455_v60  ;;  %v460_v0 = vrot.slane %v259_v61, %v459_v62  ;;  %v464_v16 = vrot.slane %v259_v61, %v463_v3 }
  0x74   :  { %322 = vmatprep.subr.bf16.mxu1 %v246_v31  ;;  %v468_v20 = vrot.slane %v259_v61, %v467_v12 }
  0x76   :  { %280 = vmatpush1.bf16.msra.mxu0 %v243_v35 }
  0x77   :  { %323 = vmatpush1.bf16.msra.mxu1 %v245_v36  ;;  %281 = vmatprep.subr.bf16.mxu0 %v248_v37 }
  0x78   :  { %324 = vmatprep.subr.bf16.mxu1 %v250_v38  ;;  %v262_v38 = vld [vmem:[#allocation14] sm:$0xff] }
  0x7a   :  { %282 = vmatpush1.bf16.msra.mxu0 %v247_v40 }
  0x7b   :  { %325 = vmatpush1.bf16.msra.mxu1 %v249_v41  ;;  %283 = vmatprep.subr.bf16.mxu0 %v252_v42 }
  0x7c   :  { %326 = vmatprep.subr.bf16.mxu1 %v254_v43 }
  0x7e   :  { %284 = vmatpush1.bf16.msra.mxu0 %v251_v44 }
  0x7f   :  { %327 = vmatpush1.bf16.msra.mxu1 %v253_v45  ;;  %285 = vmatprep.subr.bf16.mxu0 %v256_v46  ;;  %v263_v45 = vld [vmem:[#allocation14 + $0x8] sm:$0xff] }
  0x80   :  { %328 = vmatprep.subr.bf16.mxu1 %v258_v47 }
  0x82   :  { %286 = vmatpush1.bf16.msra.mxu0 %v255_v50 }
  0x83   :  { %329 = vmatpush1.bf16.msra.mxu1 %v257_v51  ;;  %366 = vmatprep.subr.bf16.mxu0 %v224_v52 }
  0x84   :  { %409 = vmatprep.subr.bf16.mxu1 %v226_v53 }
  0x85   :  { %304 = vmatmul.mubr.bf16.vlgmr.msra.gmra.mrb[0].mxu0 %v270_v54 }
  0x86   :  { %347 = vmatmul.mubr.bf16.vlgmr.msra.gmra.mrb[0].mxu1 %v270_v54  ;;  %367 = vmatpush1.bf16.msra.mxu0 %v223_v55 }
  0x87   :  { %410 = vmatpush1.bf16.msra.mxu1 %v225_v56  ;;  %398 = vmatprep.mubr.bf16.mxu0 %v951_v23 }
  0x88   :  { %441 = vmatprep.mubr.bf16.mxu1 %v951_v23 }
  0x91   :  { %665 = vmatmul.mubr.msk.bf16.vlgmr.msra.gmra.mrb[0].mxu0 %vm362_vm0, %v708_v57 }
  0x92   :  { %666 = vmatmul.mubr.msk.bf16.vlgmr.msra.gmra.mrb[0].mxu1 %vm362_vm0, %v708_v57 }
 0x164   :  { %v400_v1 = vpop.f32.mrb[0].mxu0 }
 0x165   :  { %v443_v2 = vpop.f32.mrb[0].mxu1  ;;  %v473_v4 = vadd.f32 %v456_v63, %v400_v1  ;;  %v402_v5 = vpop.f32.mrb[1].mxu0 }
 0x166   :  { %v445_v6 = vpop.f32.mrb[1].mxu1  ;;  %v474_v7 = vadd.f32 %v460_v0, %v402_v5  ;;  %v404_v8 = vpop.f32.mrb[2].mxu0  ;;  %v475_v21 = vadd.f32 %v464_v16, %v443_v2 }
 0x167   :  { %v447_v9 = vpop.f32.mrb[2].mxu1  ;;  %v667_v10 = vmul.f32 -1.442695, %v473_v4  ;;  %v477_v11 = vadd.f32 %v456_v63, %v404_v8  ;;  %v406_v13 = vpop.f32.mrb[3].mxu0  ;;  %v476_v23 = vadd.f32 %v468_v20, %v445_v6 }
 0x168   :  { %v449_v14 = vpop.f32.mrb[3].mxu1  ;;  %v669_v15 = vmul.f32 -1.442695, %v474_v7  ;;  %v478_v17 = vadd.f32 %v460_v0, %v406_v13  ;;  %v479_v22 = vadd.f32 %v464_v16, %v447_v9  ;;  %v671_v24 = vmul.f32 -1.442695, %v475_v21 }
 0x169   :  { %709 = vpow2.f32 %v667_v10  ;;  %v668_v18 = vmul.f32 -1.442695, %v477_v11  ;;  %v480_v29 = vadd.f32 %v468_v20, %v449_v14 }
 0x16a   :  { %711 = vpow2.f32 %v669_v15  ;;  %v670_v19 = vmul.f32 -1.442695, %v478_v17  ;;  %v672_v25 = vmul.f32 -1.442695, %v479_v22 }
 0x16b   :  { %713 = vpow2.f32 %v668_v18 }
 0x16c   :  { %715 = vpow2.f32 %v670_v19 }
 0x16d   :  { %717 = vtanh.f32 %v476_v23 }
 0x16e   :  { %719 = vpow2.f32 %v671_v24 }
 0x16f   :  { %721 = vpow2.f32 %v672_v25 }
 0x173   :  { %v710_v26 = vpop.eup %709 }
 0x174   :  { %v712_v27 = vpop.eup %711  ;;  %v487_v28 = vadd.f32 1.0, %v710_v26 }
 0x175   :  { %v499_v30 = vadd.f32 1.0, %v712_v27  ;;  %v714_v31 = vpop.eup %713 }
 0x176   :  { %723 = vrcp.f32 %v487_v28  ;;  %v716_v32 = vpop.eup %715  ;;  %v488_v33 = vadd.f32 1.0, %v714_v31 }
 0x177   :  { %725 = vrcp.f32 %v499_v30  ;;  %v500_v34 = vadd.f32 1.0, %v716_v32  ;;  %v718_v35 = vpop.eup %717 }
 0x178   :  { %727 = vtanh.f32 %v480_v29  ;;  %v720_v36 = vpop.eup %719 }
 0x179   :  { %729 = vrcp.f32 %v488_v33  ;;  %v722_v37 = vpop.eup %721  ;;  %v511_v41 = vadd.f32 1.0, %v720_v36 }
 0x17a   :  { %731 = vrcp.f32 %v500_v34  ;;  %v512_v48 = vadd.f32 1.0, %v722_v37 }
 0x17b   :  { %733 = vrcp.f32 %v511_v41 }
 0x180   :  { %v724_v39 = vpop.eup %723 }
 0x181   :  { %v726_v40 = vpop.eup %725  ;;  %v519_v42 = vmul.f32 %v724_v39, %v718_v35 }
 0x182   :  { %v728_v43 = vpop.eup %727  ;;  %v521_v44 = vmul.f32 %v726_v40, %v262_v38 }
 0x183   :  { %v730_v46 = vpop.eup %729 }
 0x184   :  { %v732_v47 = vpop.eup %731  ;;  %v520_v49 = vmul.f32 %v730_v46, %v728_v43  ;;  %v523_v50 = vadd.f32 %v521_v44, %v519_v42 }
 0x185   :  { %v522_v51 = vmul.f32 %v732_v47, %v263_v45 }
 0x186   :  { %735 = vtanh.f32 %v523_v50  ;;  %563 = vst [vmem:[#allocation14] sm:$0xff] %v523_v50 }
 0x187   :  { %v524_v52 = vadd.f32 %v522_v51, %v520_v49  ;;  %737 = vrcp.f32 %v512_v48 }
 0x189   :  { %739 = vtanh.f32 %v524_v52  ;;  %564 = vst [vmem:[#allocation14 + $0x8] sm:$0xff] %v524_v52 }
 0x18a   :  { %840 = shalt.err (!%p837_p8)
}
 0x18b   :  { %s841_s14 = scalar_lea.hbm %s1186_s8, 256 }
 0x18c   :  { %p842_p9 = scmp.ne.s32.totalorder %s1186_s8, %s841_s14  ;;  %p845_p10 = scmp.lt.u32.totalorder %s841_s14, %s1186_s8 }
 0x18e   :  { %p847_p11 = pnand %p845_p10, %p842_p9 }
 0x190   :  { %850 = shalt.err (!%p847_p11)
}
 0x191   :  { %592 = dma.vmem_to_hbm [thread:$0]  %s587_s15, 256, %s1186_s8, [#allocation15], %s934_s23, %s934_s23, %s935_s24   ;;  %v550_v53 = vpop.permute.xlu1 %549  ;;  %v734_v54 = vpop.eup %733  ;;  %v266_v57 = vld [vmem:[#allocation17] sm:$0xff]  ;;  %v264_v60 = vld [vmem:[#allocation16] sm:$0xff]  ;;  %v267_v1 = vld [vmem:[#allocation17 + $0x8] sm:$0xff] }
 0x192   :  { %v534_v55 = vpop.permute.xlu0 %533  ;;  %v736_v56 = vpop.eup %735  ;;  %s953_s26 = smov [#allocation13]   ;;  %v557_v62 = vmul.f32 %v550_v53, %v266_v57  ;;  %v265_v6 = vld [vmem:[#allocation16 + $0x8] sm:$0xff]  ;;  %s954_s8 = smov [#allocation16]  }
 0x193   :  { %v527_v58 = vmul.f32 %v736_v56, %v734_v54  ;;  %s574_s27 = sshll.u32 %s953_s26, 4  ;;  %v738_v59 = vpop.eup %737  ;;  %s598_s29 = sshll.u32 %s954_s8, 4  ;;  %s1119_s27 = int_to_ptr.vmem [resolvable:$true] %s574_s27  ;;  %s599_s29 = int_to_ptr.vmem [resolvable:$true] %s598_s29 }
 0x194   :  { %v740_v61 = vpop.eup %739  ;;  %s955_s30 = smov [#allocation17]   ;;  %s851_s11 = scalar_lea.vmem %s1119_s27, 256 }
 0x195   :  { %v541_v63 = vmul.f32 %v534_v55, %v527_v58  ;;  %561 = vst [vmem:[#allocation13] sm:$0xff] %v527_v58  ;;  %v555_v0 = vpop.permute.xlu1 %554  ;;  %v528_v2 = vmul.f32 %v740_v61, %v738_v59  ;;  %s610_s5 = sshll.u32 %s955_s30, 4  ;;  %p852_p12 = scmp.ne.s32.totalorder %s1119_s27, %s851_s11  ;;  %s1141_s5 = int_to_ptr.vmem [resolvable:$true] %s610_s5 }
 0x196   :  { %v539_v5 = vpop.permute.xlu0 %538  ;;  %v558_v7 = vmul.f32 %v555_v0, %v267_v1  ;;  %p856_p13 = scmp.lt.s32.totalorder %s1119_s27, %s1119_s27  ;;  %p857_p0 = scmp.lt.s32.totalorder %s851_s11, %s851_s11 }
 0x197   :  { %v543_v3 = vadd.f32 %v541_v63, %v264_v60  ;;  %v559_v4 = vadd.f32 %v557_v62, %v541_v63  ;;  %v542_v8 = vmul.f32 %v539_v5, %v528_v2  ;;  %562 = vst [vmem:[#allocation13 + $0x8] sm:$0xff] %v528_v2 }
 0x198   :  { %p858_p1 = por %p857_p0, %p856_p13 }
 0x199   :  { %565 = vst [vmem:[#allocation16] sm:$0xff] %v543_v3  ;;  %567 = vst [vmem:[#allocation17] sm:$0xff] %v559_v4 }
 0x19a   :  { %p859_p2 = pnand %p858_p1, %p852_p12 }
 0x19c   :  { %862 = shalt.err (!%p859_p2)
}
 0x19d   :  { %s863_s25 = scalar_lea.hbm %s1185_s7, 256 }
 0x19e   :  { %p864_p3 = scmp.ne.s32.totalorder %s1185_s7, %s863_s25  ;;  %p867_p4 = scmp.lt.u32.totalorder %s863_s25, %s1185_s7 }
 0x1a0   :  { %p869_p5 = pnand %p867_p4, %p864_p3 }
 0x1a2   :  { %872 = shalt.err (!%p869_p5)
}
 0x1a3   :  { %580 = dma.vmem_to_hbm [thread:$0]  %s1119_s27, 256, %s1185_s7, [#allocation7], %s934_s23, %s934_s23, %s935_s24   ;;  %v544_v9 = vadd.f32 %v542_v8, %v265_v6  ;;  %v560_v10 = vadd.f32 %v558_v7, %v542_v8 }
 0x1a4   :  { %s873_s16 = scalar_lea.vmem %s599_s29, 256  ;;  %p878_p7 = scmp.lt.s32.totalorder %s599_s29, %s599_s29 }
 0x1a5   :  { %566 = vst [vmem:[#allocation16 + $0x8] sm:$0xff] %v544_v9  ;;  %568 = vst [vmem:[#allocation17 + $0x8] sm:$0xff] %v560_v10  ;;  %p874_p6 = scmp.ne.s32.totalorder %s599_s29, %s873_s16  ;;  %p879_p8 = scmp.lt.s32.totalorder %s873_s16, %s873_s16 }
 0x1a7   :  { %p880_p9 = por %p879_p8, %p878_p7 }
 0x1a9   :  { %p881_p10 = pnand %p880_p9, %p874_p6 }
 0x1ab   :  { %884 = shalt.err (!%p881_p10)
}
 0x1ac   :  { %s885_s14 = scalar_lea.hbm %s1187_s9, 256 }
 0x1ad   :  { %p886_p11 = scmp.ne.s32.totalorder %s1187_s9, %s885_s14  ;;  %p889_p12 = scmp.lt.u32.totalorder %s885_s14, %s1187_s9 }
 0x1af   :  { %p891_p13 = pnand %p889_p12, %p886_p11 }
 0x1b1   :  { %894 = shalt.err (!%p891_p13)
}
 0x1b2   :  { %604 = dma.vmem_to_hbm [thread:$0]  %s599_s29, 256, %s1187_s9, [#allocation15], %s934_s23, %s934_s23, %s935_s24  }
 0x1b3   :  { %s895_s21 = scalar_lea.vmem %s1141_s5, 256  ;;  %p900_p1 = scmp.lt.s32.totalorder %s1141_s5, %s1141_s5 }
 0x1b4   :  { %p896_p0 = scmp.ne.s32.totalorder %s1141_s5, %s895_s21  ;;  %p901_p2 = scmp.lt.s32.totalorder %s895_s21, %s895_s21 }
 0x1b6   :  { %p902_p3 = por %p901_p2, %p900_p1 }
 0x1b8   :  { %p903_p4 = pnand %p902_p3, %p896_p0 }
 0x1ba   :  { %906 = shalt.err (!%p903_p4)
}
 0x1bb   :  { %s907_s8 = scalar_lea.hbm %s1188_s10, 256 }
 0x1bc   :  { %p908_p5 = scmp.ne.s32.totalorder %s1188_s10, %s907_s8  ;;  %p911_p6 = scmp.lt.u32.totalorder %s907_s8, %s1188_s10 }
 0x1be   :  { %p913_p7 = pnand %p911_p6, %p908_p5 }
 0x1c0   :  { %916 = shalt.err (!%p913_p7)
}
 0x1c1   :  { %616 = dma.vmem_to_hbm [thread:$0]  %s1141_s5, 256, %s1188_s10, [#allocation18], %s934_s23, %s934_s23, %s935_s24  }
 0x1c2   :  { %927 = dma.done.wait [#allocation7], 256  }
 0x1c3   :  { %928 = vsyncadd [#allocation7], 4294967040 }
 0x1c4   :  { %929 = dma.done.wait [#allocation15], 512  }
 0x1c5   :  { %930 = vsyncadd [#allocation15], 4294966784 }
 0x1c6   :  { %931 = dma.done.wait [#allocation18], 256  }
 0x1c7   :  { %932 = vsyncadd [#allocation18], 4294967040 }
 0x1c8   :  { %629 = vsyncpa [#allocation6], 1 }
 0x1c9   :  { %630 = vsyncpa [#allocation9], 1 }
 0x1ca   :  { %631 = vsyncpa [#allocation12], 1 }
 0x1cb   :  { %632 = vsyncpa [#allocation7], 1 }
 0x1cc   :  { %633 = vsyncpa [#allocation15], 1 }
 0x1cd   :  { %634 = vsyncpa [#allocation18], 1 }
 0x1ce   :  { %635 = vsyncmov [#allocation4] }
 0x1d1   :  { %s636_s25 = vpop.sfrf %635 }
 0x1d2   :  { %p673_p8 = scmp.ne.s32.totalorder %s636_s25, 0 }
 0x1d4   :  { %640 = shalt.err (%p673_p8)  }
 0x1d5   :  { %642 = vsyncmov [#allocation4 + $0x1] }
 0x1d8   :  { %s643_s6 = vpop.sfrf %642 }
 0x1d9   :  { %p674_p9 = scmp.ne.s32.totalorder %s643_s6, 0 }
 0x1db   :  { %647 = shalt.err (%p674_p9)  }

</bundles_post_ra>
